<compile_context>
chip_gen: v6e
topology: v6e:2x2x1
jax: 0.10.0
libtpu: 0.0.40
codegen_flags: <defaults>
</compile_context>

<pallas_src>
import jax
import jax.numpy as jnp
from jax.experimental import pallas as pl
from jax.experimental.pallas import tpu as pltpu

EMB = 32  # timestep embedding width


# --------------------------- plain-JAX glue -------------------------------- #
def _timestep_embedding(timesteps, dim):
    """Sinusoidal timestep embedding."""
    half = dim // 2
    freqs = jnp.exp(
        -jnp.log(10000.0) * jnp.arange(half, dtype=jnp.float32) / half)
    args = timesteps.astype(jnp.float32)[:, None] * freqs[None, :]
    return jnp.concatenate([jnp.cos(args), jnp.sin(args)], axis=-1)  # (N, dim)


# ----------------------------- Pallas kernel ------------------------------- #
def _make_denoiser_kernel(c, b_tile):
    """Kernel: 1x1 conv over channels (VPU FMA chain) + FiLM modulation.

    Args (in pallas_call order):
      wc_ref   : SMEM (C, C)   1x1-conv weight
      bc_ref   : SMEM (C,)     1x1-conv bias
      film_ref : SMEM (N, 2C)  per-batch [scale | shift] table (hoisted MLP)
      x_ref    : VMEM (B_TILE, C, HW) input block
      o_ref    : VMEM (B_TILE, C, HW) output block
    """

    def kernel(wc_ref, bc_ref, film_ref, x_ref, o_ref):
        b0 = pl.program_id(0) * b_tile  # first batch index of this block

        # Tiny weights: read once as scalars; scalar->vector broadcast is free.
        wcs = [[wc_ref[o, k] for k in range(c)] for o in range(c)]
        bcs = [bc_ref[o] for o in range(c)]

        for bi in range(b_tile):
            for o in range(c):
                # 1x1 conv over channels as a C-term broadcast-FMA chain.
                acc = x_ref[bi, 0, :] * wcs[o][0]
                for k in range(1, c):
                    acc = acc + x_ref[bi, k, :] * wcs[o][k]
                acc = acc + bcs[o]
                # FiLM modulation with per-(batch, channel) scalars from SMEM.
                scale = film_ref[b0 + bi, o]
                shift = film_ref[b0 + bi, c + o]
                o_ref[bi, o, :] = (acc * (1.0 + scale) + shift).astype(o_ref.dtype)

    return kernel


def _pick_batch_tile(n, c, hw, budget_bytes=2 << 20):
    """Largest divisor of n whose (b, c, hw) f32 block fits the VMEM budget."""
    per_batch = c * hw * 4
    b = max(1, min(n, budget_bytes // per_batch))
    while n % b:
        b -= 1
    return int(b)


@jax.jit
def _apply_model_pallas(x_nchw, timesteps, w1, b1, w2, b2, wc, bc):
    n, c, h, w = x_nchw.shape
    hw = h * w
    x = x_nchw.reshape(n, c, hw).astype(jnp.float32)

    # --- hoisted timestep conditioning (tiny batched matmuls, plain JAX) ---
    temb = _timestep_embedding(timesteps, EMB)            # (N, EMB)
    hid = temb @ w1.T + b1                                # (N, EMB)
    hid = hid * jax.nn.sigmoid(hid)                       # SiLU
    film = (hid @ w2.T + b2).astype(jnp.float32)          # (N, 2C) = [scale|shift]

    b_tile = _pick_batch_tile(n, c, hw)
    grid = (n // b_tile,)

    kernel = _make_denoiser_kernel(c, b_tile)
    out = pl.pallas_call(
        kernel,
        out_shape=jax.ShapeDtypeStruct((n, c, hw), jnp.float32),
        grid=grid,
        in_specs=[
            pl.BlockSpec(memory_space=pltpu.MemorySpace.SMEM),   # wc   (C, C)
            pl.BlockSpec(memory_space=pltpu.MemorySpace.SMEM),   # bc   (C,)
            pl.BlockSpec(memory_space=pltpu.MemorySpace.SMEM),   # film (N, 2C)
            pl.BlockSpec((b_tile, c, hw), lambda i: (i, 0, 0)),  # x
        ],
        out_specs=pl.BlockSpec((b_tile, c, hw), lambda i: (i, 0, 0)),
        compiler_params=pltpu.CompilerParams(
            dimension_semantics=("parallel",)),
    )(wc, bc, film, x)
    return out.reshape(n, c, h, w)


def _apply_model_reference(x_nchw, timesteps, w1, b1, w2, b2, wc, bc):
    """Pure-JAX reference for correctness checking."""
    n, c, h, w = x_nchw.shape
    x = x_nchw.reshape(n, c, h * w).astype(jnp.float32)
    temb = _timestep_embedding(timesteps, EMB)             # (N, EMB)
    hid = temb @ w1.T + b1
    hid = hid * jax.nn.sigmoid(hid)
    film = hid @ w2.T + b2                                 # (N, 2C)
    scale, shift = film[:, :c], film[:, c:]
    y = jnp.einsum("oc,ncl->nol", wc, x) + bc[None, :, None]
    out = y * (1.0 + scale[:, :, None]) + shift[:, :, None]
    return out.reshape(n, c, h, w)


# --------------------------- module-like wrappers -------------------------- #
class SyntheticLatentDenoiser:
    """Synthetic stand-in for the CompVis inner model (deterministic init)."""

    def __init__(self, channels, key):
        k1, k2, k3, k4, k5, k6 = jax.random.split(key, 6)
        c = channels
        self.w1 = 0.1 * jax.random.normal(k1, (EMB, EMB), jnp.float32)
        self.b1 = 0.05 * jax.random.normal(k4, (EMB,), jnp.float32)
        self.w2 = 0.1 * jax.random.normal(k2, (2 * c, EMB), jnp.float32)
        self.b2 = 0.05 * jax.random.normal(k5, (2 * c,), jnp.float32)
        self.wc = 0.1 * jax.random.normal(k3, (c, c), jnp.float32) \
            + jnp.eye(c, dtype=jnp.float32)
        self.bc = 0.05 * jax.random.normal(k6, (c,), jnp.float32)

    def params(self):
        return (self.w1, self.b1, self.w2, self.b2, self.wc, self.bc)

    def apply_model(self, x, timesteps, **kwargs):
        return _apply_model_pallas(x, timesteps, *self.params())


class CompVisTimestepsDenoiser:
    """JAX/Pallas mirror of the PyTorch delegation wrapper."""

    def __init__(self, model):
        self.inner_model = model

    def __call__(self, input, timesteps, **kwargs):
        return self.inner_model.apply_model(input, timesteps, **kwargs)


# ---------------------------------- main ----------------------------------- #
if __name__ == "__main__":
    key = jax.random.PRNGKey(0)
    k_x, k_t, k_p = jax.random.split(key, 3)

    N, C, H, W = 2, 4, 16, 16
    x = jax.random.normal(k_x, (N, C, H, W), jnp.float32)            # NCHW
    timesteps = jax.random.randint(k_t, (N,), 0, 1000).astype(jnp.float32)

    inner = SyntheticLatentDenoiser(C, k_p)
    denoiser = CompVisTimestepsDenoiser(inner)

    out = jax.block_until_ready(denoiser(x, timesteps))
    ref = _apply_model_reference(x, timesteps, *inner.params())

    assert out.shape == (N, C, H, W)
    assert jnp.allclose(out, ref, atol=1e-4, rtol=1e-4), "mismatch vs reference"

    print("KERNEL_OK")
</pallas_src>

<mosaic_0001>
module attributes {stable_mosaic.version = 11 : i64} {
  func.func @kernel(%arg0: i32, %arg1: memref<4x4xf32, #tpu.memory_space<smem>>, %arg2: memref<4xf32, #tpu.memory_space<smem>>, %arg3: memref<2x8xf32, #tpu.memory_space<smem>>, %arg4: memref<2x4x256xf32, #tpu.memory_space<vmem>>, %arg5: memref<2x4x256xf32, #tpu.memory_space<vmem>>) attributes {dimension_semantics = [#tpu.dimension_semantics<parallel>], iteration_bounds = array<i64: 1>, scalar_prefetch = 0 : i64, scratch_operands = 0 : i64, tpu.core_type = #tpu.core_type<tc>, window_params = [{transform_indices = @transform_0, window_bounds = array<i64: 4, 4>}, {transform_indices = @transform_1, window_bounds = array<i64: 4>}, {transform_indices = @transform_2, window_bounds = array<i64: 2, 8>}, {transform_indices = @transform_3, window_bounds = array<i64: 2, 4, 256>}, {transform_indices = @transform_4, window_bounds = array<i64: 2, 4, 256>}]} {
    %c2_i32 = arith.constant 2 : i32
    %0 = arith.muli %arg0, %c2_i32 : i32
    %c0 = arith.constant 0 : index
    %c0_0 = arith.constant 0 : index
    %1 = memref.load %arg1[%c0, %c0_0] : memref<4x4xf32, #tpu.memory_space<smem>>
    %c0_1 = arith.constant 0 : index
    %c1 = arith.constant 1 : index
    %2 = memref.load %arg1[%c0_1, %c1] : memref<4x4xf32, #tpu.memory_space<smem>>
    %c0_2 = arith.constant 0 : index
    %c2 = arith.constant 2 : index
    %3 = memref.load %arg1[%c0_2, %c2] : memref<4x4xf32, #tpu.memory_space<smem>>
    %c0_3 = arith.constant 0 : index
    %c3 = arith.constant 3 : index
    %4 = memref.load %arg1[%c0_3, %c3] : memref<4x4xf32, #tpu.memory_space<smem>>
    %c1_4 = arith.constant 1 : index
    %c0_5 = arith.constant 0 : index
    %5 = memref.load %arg1[%c1_4, %c0_5] : memref<4x4xf32, #tpu.memory_space<smem>>
    %c1_6 = arith.constant 1 : index
    %c1_7 = arith.constant 1 : index
    %6 = memref.load %arg1[%c1_6, %c1_7] : memref<4x4xf32, #tpu.memory_space<smem>>
    %c1_8 = arith.constant 1 : index
    %c2_9 = arith.constant 2 : index
    %7 = memref.load %arg1[%c1_8, %c2_9] : memref<4x4xf32, #tpu.memory_space<smem>>
    %c1_10 = arith.constant 1 : index
    %c3_11 = arith.constant 3 : index
    %8 = memref.load %arg1[%c1_10, %c3_11] : memref<4x4xf32, #tpu.memory_space<smem>>
    %c2_12 = arith.constant 2 : index
    %c0_13 = arith.constant 0 : index
    %9 = memref.load %arg1[%c2_12, %c0_13] : memref<4x4xf32, #tpu.memory_space<smem>>
    %c2_14 = arith.constant 2 : index
    %c1_15 = arith.constant 1 : index
    %10 = memref.load %arg1[%c2_14, %c1_15] : memref<4x4xf32, #tpu.memory_space<smem>>
    %c2_16 = arith.constant 2 : index
    %c2_17 = arith.constant 2 : index
    %11 = memref.load %arg1[%c2_16, %c2_17] : memref<4x4xf32, #tpu.memory_space<smem>>
    %c2_18 = arith.constant 2 : index
    %c3_19 = arith.constant 3 : index
    %12 = memref.load %arg1[%c2_18, %c3_19] : memref<4x4xf32, #tpu.memory_space<smem>>
    %c3_20 = arith.constant 3 : index
    %c0_21 = arith.constant 0 : index
    %13 = memref.load %arg1[%c3_20, %c0_21] : memref<4x4xf32, #tpu.memory_space<smem>>
    %c3_22 = arith.constant 3 : index
    %c1_23 = arith.constant 1 : index
    %14 = memref.load %arg1[%c3_22, %c1_23] : memref<4x4xf32, #tpu.memory_space<smem>>
    %c3_24 = arith.constant 3 : index
    %c2_25 = arith.constant 2 : index
    %15 = memref.load %arg1[%c3_24, %c2_25] : memref<4x4xf32, #tpu.memory_space<smem>>
    %c3_26 = arith.constant 3 : index
    %c3_27 = arith.constant 3 : index
    %16 = memref.load %arg1[%c3_26, %c3_27] : memref<4x4xf32, #tpu.memory_space<smem>>
    %c0_28 = arith.constant 0 : index
    %17 = memref.load %arg2[%c0_28] : memref<4xf32, #tpu.memory_space<smem>>
    %c1_29 = arith.constant 1 : index
    %18 = memref.load %arg2[%c1_29] : memref<4xf32, #tpu.memory_space<smem>>
    %c2_30 = arith.constant 2 : index
    %19 = memref.load %arg2[%c2_30] : memref<4xf32, #tpu.memory_space<smem>>
    %c3_31 = arith.constant 3 : index
    %20 = memref.load %arg2[%c3_31] : memref<4xf32, #tpu.memory_space<smem>>
    %c0_32 = arith.constant 0 : index
    %c0_33 = arith.constant 0 : index
    %c0_34 = arith.constant 0 : index
    %21 = vector.load %arg4[%c0_32, %c0_33, %c0_34] : memref<2x4x256xf32, #tpu.memory_space<vmem>>, vector<1x1x256xf32>
    %22 = vector.shape_cast %21 : vector<1x1x256xf32> to vector<256xf32>
    %23 = vector.broadcast %1 : f32 to vector<256xf32>
    %24 = arith.mulf %22, %23 : vector<256xf32>
    %c0_35 = arith.constant 0 : index
    %c1_36 = arith.constant 1 : index
    %c0_37 = arith.constant 0 : index
    %25 = vector.load %arg4[%c0_35, %c1_36, %c0_37] : memref<2x4x256xf32, #tpu.memory_space<vmem>>, vector<1x1x256xf32>
    %26 = vector.shape_cast %25 : vector<1x1x256xf32> to vector<256xf32>
    %27 = vector.broadcast %2 : f32 to vector<256xf32>
    %28 = arith.mulf %26, %27 : vector<256xf32>
    %29 = arith.addf %24, %28 : vector<256xf32>
    %c0_38 = arith.constant 0 : index
    %c2_39 = arith.constant 2 : index
    %c0_40 = arith.constant 0 : index
    %30 = vector.load %arg4[%c0_38, %c2_39, %c0_40] : memref<2x4x256xf32, #tpu.memory_space<vmem>>, vector<1x1x256xf32>
    %31 = vector.shape_cast %30 : vector<1x1x256xf32> to vector<256xf32>
    %32 = vector.broadcast %3 : f32 to vector<256xf32>
    %33 = arith.mulf %31, %32 : vector<256xf32>
    %34 = arith.addf %29, %33 : vector<256xf32>
    %c0_41 = arith.constant 0 : index
    %c3_42 = arith.constant 3 : index
    %c0_43 = arith.constant 0 : index
    %35 = vector.load %arg4[%c0_41, %c3_42, %c0_43] : memref<2x4x256xf32, #tpu.memory_space<vmem>>, vector<1x1x256xf32>
    %36 = vector.shape_cast %35 : vector<1x1x256xf32> to vector<256xf32>
    %37 = vector.broadcast %4 : f32 to vector<256xf32>
    %38 = arith.mulf %36, %37 : vector<256xf32>
    %39 = arith.addf %34, %38 : vector<256xf32>
    %40 = vector.broadcast %17 : f32 to vector<256xf32>
    %41 = arith.addf %39, %40 : vector<256xf32>
    %c0_i32 = arith.constant 0 : i32
    %42 = arith.addi %0, %c0_i32 : i32
    %43 = arith.index_cast %42 : i32 to index
    %c0_44 = arith.constant 0 : index
    %44 = memref.load %arg3[%43, %c0_44] : memref<2x8xf32, #tpu.memory_space<smem>>
    %c0_i32_45 = arith.constant 0 : i32
    %45 = arith.addi %0, %c0_i32_45 : i32
    %46 = arith.index_cast %45 : i32 to index
    %c4 = arith.constant 4 : index
    %47 = memref.load %arg3[%46, %c4] : memref<2x8xf32, #tpu.memory_space<smem>>
    %cst = arith.constant 1.000000e+00 : f32
    %48 = arith.addf %cst, %44 : f32
    %49 = vector.broadcast %48 : f32 to vector<256xf32>
    %50 = arith.mulf %41, %49 : vector<256xf32>
    %51 = vector.broadcast %47 : f32 to vector<256xf32>
    %52 = arith.addf %50, %51 : vector<256xf32>
    %c0_46 = arith.constant 0 : index
    %c0_47 = arith.constant 0 : index
    %c0_48 = arith.constant 0 : index
    %53 = vector.load %arg5[%c0_46, %c0_47, %c0_48] : memref<2x4x256xf32, #tpu.memory_space<vmem>>, vector<1x1x256xf32>
    %54 = vector.shape_cast %53 : vector<1x1x256xf32> to vector<256xf32>
    %55 = vector.shape_cast %52 : vector<256xf32> to vector<1x1x256xf32>
    tpu.vector_store %arg5[%c0_46, %c0_47, %c0_48], %55 {strides = array<i32>} : memref<2x4x256xf32, #tpu.memory_space<vmem>>, vector<1x1x256xf32>,
    %c0_49 = arith.constant 0 : index
    %c0_50 = arith.constant 0 : index
    %c0_51 = arith.constant 0 : index
    %56 = vector.load %arg4[%c0_49, %c0_50, %c0_51] : memref<2x4x256xf32, #tpu.memory_space<vmem>>, vector<1x1x256xf32>
    %57 = vector.shape_cast %56 : vector<1x1x256xf32> to vector<256xf32>
    %58 = vector.broadcast %5 : f32 to vector<256xf32>
    %59 = arith.mulf %57, %58 : vector<256xf32>
    %c0_52 = arith.constant 0 : index
    %c1_53 = arith.constant 1 : index
    %c0_54 = arith.constant 0 : index
    %60 = vector.load %arg4[%c0_52, %c1_53, %c0_54] : memref<2x4x256xf32, #tpu.memory_space<vmem>>, vector<1x1x256xf32>
    %61 = vector.shape_cast %60 : vector<1x1x256xf32> to vector<256xf32>
    %62 = vector.broadcast %6 : f32 to vector<256xf32>
    %63 = arith.mulf %61, %62 : vector<256xf32>
    %64 = arith.addf %59, %63 : vector<256xf32>
    %c0_55 = arith.constant 0 : index
    %c2_56 = arith.constant 2 : index
    %c0_57 = arith.constant 0 : index
    %65 = vector.load %arg4[%c0_55, %c2_56, %c0_57] : memref<2x4x256xf32, #tpu.memory_space<vmem>>, vector<1x1x256xf32>
    %66 = vector.shape_cast %65 : vector<1x1x256xf32> to vector<256xf32>
    %67 = vector.broadcast %7 : f32 to vector<256xf32>
    %68 = arith.mulf %66, %67 : vector<256xf32>
    %69 = arith.addf %64, %68 : vector<256xf32>
    %c0_58 = arith.constant 0 : index
    %c3_59 = arith.constant 3 : index
    %c0_60 = arith.constant 0 : index
    %70 = vector.load %arg4[%c0_58, %c3_59, %c0_60] : memref<2x4x256xf32, #tpu.memory_space<vmem>>, vector<1x1x256xf32>
    %71 = vector.shape_cast %70 : vector<1x1x256xf32> to vector<256xf32>
    %72 = vector.broadcast %8 : f32 to vector<256xf32>
    %73 = arith.mulf %71, %72 : vector<256xf32>
    %74 = arith.addf %69, %73 : vector<256xf32>
    %75 = vector.broadcast %18 : f32 to vector<256xf32>
    %76 = arith.addf %74, %75 : vector<256xf32>
    %c0_i32_61 = arith.constant 0 : i32
    %77 = arith.addi %0, %c0_i32_61 : i32
    %78 = arith.index_cast %77 : i32 to index
    %c1_62 = arith.constant 1 : index
    %79 = memref.load %arg3[%78, %c1_62] : memref<2x8xf32, #tpu.memory_space<smem>>
    %c0_i32_63 = arith.constant 0 : i32
    %80 = arith.addi %0, %c0_i32_63 : i32
    %81 = arith.index_cast %80 : i32 to index
    %c5 = arith.constant 5 : index
    %82 = memref.load %arg3[%81, %c5] : memref<2x8xf32, #tpu.memory_space<smem>>
    %cst_64 = arith.constant 1.000000e+00 : f32
    %83 = arith.addf %cst_64, %79 : f32
    %84 = vector.broadcast %83 : f32 to vector<256xf32>
    %85 = arith.mulf %76, %84 : vector<256xf32>
    %86 = vector.broadcast %82 : f32 to vector<256xf32>
    %87 = arith.addf %85, %86 : vector<256xf32>
    %c0_65 = arith.constant 0 : index
    %c1_66 = arith.constant 1 : index
    %c0_67 = arith.constant 0 : index
    %88 = vector.load %arg5[%c0_65, %c1_66, %c0_67] : memref<2x4x256xf32, #tpu.memory_space<vmem>>, vector<1x1x256xf32>
    %89 = vector.shape_cast %88 : vector<1x1x256xf32> to vector<256xf32>
    %90 = vector.shape_cast %87 : vector<256xf32> to vector<1x1x256xf32>
    tpu.vector_store %arg5[%c0_65, %c1_66, %c0_67], %90 {strides = array<i32>} : memref<2x4x256xf32, #tpu.memory_space<vmem>>, vector<1x1x256xf32>,
    %c0_68 = arith.constant 0 : index
    %c0_69 = arith.constant 0 : index
    %c0_70 = arith.constant 0 : index
    %91 = vector.load %arg4[%c0_68, %c0_69, %c0_70] : memref<2x4x256xf32, #tpu.memory_space<vmem>>, vector<1x1x256xf32>
    %92 = vector.shape_cast %91 : vector<1x1x256xf32> to vector<256xf32>
    %93 = vector.broadcast %9 : f32 to vector<256xf32>
    %94 = arith.mulf %92, %93 : vector<256xf32>
    %c0_71 = arith.constant 0 : index
    %c1_72 = arith.constant 1 : index
    %c0_73 = arith.constant 0 : index
    %95 = vector.load %arg4[%c0_71, %c1_72, %c0_73] : memref<2x4x256xf32, #tpu.memory_space<vmem>>, vector<1x1x256xf32>
    %96 = vector.shape_cast %95 : vector<1x1x256xf32> to vector<256xf32>
    %97 = vector.broadcast %10 : f32 to vector<256xf32>
    %98 = arith.mulf %96, %97 : vector<256xf32>
    %99 = arith.addf %94, %98 : vector<256xf32>
    %c0_74 = arith.constant 0 : index
    %c2_75 = arith.constant 2 : index
    %c0_76 = arith.constant 0 : index
    %100 = vector.load %arg4[%c0_74, %c2_75, %c0_76] : memref<2x4x256xf32, #tpu.memory_space<vmem>>, vector<1x1x256xf32>
    %101 = vector.shape_cast %100 : vector<1x1x256xf32> to vector<256xf32>
    %102 = vector.broadcast %11 : f32 to vector<256xf32>
    %103 = arith.mulf %101, %102 : vector<256xf32>
    %104 = arith.addf %99, %103 : vector<256xf32>
    %c0_77 = arith.constant 0 : index
    %c3_78 = arith.constant 3 : index
    %c0_79 = arith.constant 0 : index
    %105 = vector.load %arg4[%c0_77, %c3_78, %c0_79] : memref<2x4x256xf32, #tpu.memory_space<vmem>>, vector<1x1x256xf32>
    %106 = vector.shape_cast %105 : vector<1x1x256xf32> to vector<256xf32>
    %107 = vector.broadcast %12 : f32 to vector<256xf32>
    %108 = arith.mulf %106, %107 : vector<256xf32>
    %109 = arith.addf %104, %108 : vector<256xf32>
    %110 = vector.broadcast %19 : f32 to vector<256xf32>
    %111 = arith.addf %109, %110 : vector<256xf32>
    %c0_i32_80 = arith.constant 0 : i32
    %112 = arith.addi %0, %c0_i32_80 : i32
    %113 = arith.index_cast %112 : i32 to index
    %c2_81 = arith.constant 2 : index
    %114 = memref.load %arg3[%113, %c2_81] : memref<2x8xf32, #tpu.memory_space<smem>>
    %c0_i32_82 = arith.constant 0 : i32
    %115 = arith.addi %0, %c0_i32_82 : i32
    %116 = arith.index_cast %115 : i32 to index
    %c6 = arith.constant 6 : index
    %117 = memref.load %arg3[%116, %c6] : memref<2x8xf32, #tpu.memory_space<smem>>
    %cst_83 = arith.constant 1.000000e+00 : f32
    %118 = arith.addf %cst_83, %114 : f32
    %119 = vector.broadcast %118 : f32 to vector<256xf32>
    %120 = arith.mulf %111, %119 : vector<256xf32>
    %121 = vector.broadcast %117 : f32 to vector<256xf32>
    %122 = arith.addf %120, %121 : vector<256xf32>
    %c0_84 = arith.constant 0 : index
    %c2_85 = arith.constant 2 : index
    %c0_86 = arith.constant 0 : index
    %123 = vector.load %arg5[%c0_84, %c2_85, %c0_86] : memref<2x4x256xf32, #tpu.memory_space<vmem>>, vector<1x1x256xf32>
    %124 = vector.shape_cast %123 : vector<1x1x256xf32> to vector<256xf32>
    %125 = vector.shape_cast %122 : vector<256xf32> to vector<1x1x256xf32>
    tpu.vector_store %arg5[%c0_84, %c2_85, %c0_86], %125 {strides = array<i32>} : memref<2x4x256xf32, #tpu.memory_space<vmem>>, vector<1x1x256xf32>,
    %c0_87 = arith.constant 0 : index
    %c0_88 = arith.constant 0 : index
    %c0_89 = arith.constant 0 : index
    %126 = vector.load %arg4[%c0_87, %c0_88, %c0_89] : memref<2x4x256xf32, #tpu.memory_space<vmem>>, vector<1x1x256xf32>
    %127 = vector.shape_cast %126 : vector<1x1x256xf32> to vector<256xf32>
    %128 = vector.broadcast %13 : f32 to vector<256xf32>
    %129 = arith.mulf %127, %128 : vector<256xf32>
    %c0_90 = arith.constant 0 : index
    %c1_91 = arith.constant 1 : index
    %c0_92 = arith.constant 0 : index
    %130 = vector.load %arg4[%c0_90, %c1_91, %c0_92] : memref<2x4x256xf32, #tpu.memory_space<vmem>>, vector<1x1x256xf32>
    %131 = vector.shape_cast %130 : vector<1x1x256xf32> to vector<256xf32>
    %132 = vector.broadcast %14 : f32 to vector<256xf32>
    %133 = arith.mulf %131, %132 : vector<256xf32>
    %134 = arith.addf %129, %133 : vector<256xf32>
    %c0_93 = arith.constant 0 : index
    %c2_94 = arith.constant 2 : index
    %c0_95 = arith.constant 0 : index
    %135 = vector.load %arg4[%c0_93, %c2_94, %c0_95] : memref<2x4x256xf32, #tpu.memory_space<vmem>>, vector<1x1x256xf32>
    %136 = vector.shape_cast %135 : vector<1x1x256xf32> to vector<256xf32>
    %137 = vector.broadcast %15 : f32 to vector<256xf32>
    %138 = arith.mulf %136, %137 : vector<256xf32>
    %139 = arith.addf %134, %138 : vector<256xf32>
    %c0_96 = arith.constant 0 : index
    %c3_97 = arith.constant 3 : index
    %c0_98 = arith.constant 0 : index
    %140 = vector.load %arg4[%c0_96, %c3_97, %c0_98] : memref<2x4x256xf32, #tpu.memory_space<vmem>>, vector<1x1x256xf32>
    %141 = vector.shape_cast %140 : vector<1x1x256xf32> to vector<256xf32>
    %142 = vector.broadcast %16 : f32 to vector<256xf32>
    %143 = arith.mulf %141, %142 : vector<256xf32>
    %144 = arith.addf %139, %143 : vector<256xf32>
    %145 = vector.broadcast %20 : f32 to vector<256xf32>
    %146 = arith.addf %144, %145 : vector<256xf32>
    %c0_i32_99 = arith.constant 0 : i32
    %147 = arith.addi %0, %c0_i32_99 : i32
    %148 = arith.index_cast %147 : i32 to index
    %c3_100 = arith.constant 3 : index
    %149 = memref.load %arg3[%148, %c3_100] : memref<2x8xf32, #tpu.memory_space<smem>>
    %c0_i32_101 = arith.constant 0 : i32
    %150 = arith.addi %0, %c0_i32_101 : i32
    %151 = arith.index_cast %150 : i32 to index
    %c7 = arith.constant 7 : index
    %152 = memref.load %arg3[%151, %c7] : memref<2x8xf32, #tpu.memory_space<smem>>
    %cst_102 = arith.constant 1.000000e+00 : f32
    %153 = arith.addf %cst_102, %149 : f32
    %154 = vector.broadcast %153 : f32 to vector<256xf32>
    %155 = arith.mulf %146, %154 : vector<256xf32>
    %156 = vector.broadcast %152 : f32 to vector<256xf32>
    %157 = arith.addf %155, %156 : vector<256xf32>
    %c0_103 = arith.constant 0 : index
    %c3_104 = arith.constant 3 : index
    %c0_105 = arith.constant 0 : index
    %158 = vector.load %arg5[%c0_103, %c3_104, %c0_105] : memref<2x4x256xf32, #tpu.memory_space<vmem>>, vector<1x1x256xf32>
    %159 = vector.shape_cast %158 : vector<1x1x256xf32> to vector<256xf32>
    %160 = vector.shape_cast %157 : vector<256xf32> to vector<1x1x256xf32>
    tpu.vector_store %arg5[%c0_103, %c3_104, %c0_105], %160 {strides = array<i32>} : memref<2x4x256xf32, #tpu.memory_space<vmem>>, vector<1x1x256xf32>,
    %c1_106 = arith.constant 1 : index
    %c0_107 = arith.constant 0 : index
    %c0_108 = arith.constant 0 : index
    %161 = vector.load %arg4[%c1_106, %c0_107, %c0_108] : memref<2x4x256xf32, #tpu.memory_space<vmem>>, vector<1x1x256xf32>
    %162 = vector.shape_cast %161 : vector<1x1x256xf32> to vector<256xf32>
    %163 = vector.broadcast %1 : f32 to vector<256xf32>
    %164 = arith.mulf %162, %163 : vector<256xf32>
    %c1_109 = arith.constant 1 : index
    %c1_110 = arith.constant 1 : index
    %c0_111 = arith.constant 0 : index
    %165 = vector.load %arg4[%c1_109, %c1_110, %c0_111] : memref<2x4x256xf32, #tpu.memory_space<vmem>>, vector<1x1x256xf32>
    %166 = vector.shape_cast %165 : vector<1x1x256xf32> to vector<256xf32>
    %167 = vector.broadcast %2 : f32 to vector<256xf32>
    %168 = arith.mulf %166, %167 : vector<256xf32>
    %169 = arith.addf %164, %168 : vector<256xf32>
    %c1_112 = arith.constant 1 : index
    %c2_113 = arith.constant 2 : index
    %c0_114 = arith.constant 0 : index
    %170 = vector.load %arg4[%c1_112, %c2_113, %c0_114] : memref<2x4x256xf32, #tpu.memory_space<vmem>>, vector<1x1x256xf32>
    %171 = vector.shape_cast %170 : vector<1x1x256xf32> to vector<256xf32>
    %172 = vector.broadcast %3 : f32 to vector<256xf32>
    %173 = arith.mulf %171, %172 : vector<256xf32>
    %174 = arith.addf %169, %173 : vector<256xf32>
    %c1_115 = arith.constant 1 : index
    %c3_116 = arith.constant 3 : index
    %c0_117 = arith.constant 0 : index
    %175 = vector.load %arg4[%c1_115, %c3_116, %c0_117] : memref<2x4x256xf32, #tpu.memory_space<vmem>>, vector<1x1x256xf32>
    %176 = vector.shape_cast %175 : vector<1x1x256xf32> to vector<256xf32>
    %177 = vector.broadcast %4 : f32 to vector<256xf32>
    %178 = arith.mulf %176, %177 : vector<256xf32>
    %179 = arith.addf %174, %178 : vector<256xf32>
    %180 = vector.broadcast %17 : f32 to vector<256xf32>
    %181 = arith.addf %179, %180 : vector<256xf32>
    %c1_i32 = arith.constant 1 : i32
    %182 = arith.addi %0, %c1_i32 : i32
    %183 = arith.index_cast %182 : i32 to index
    %c0_118 = arith.constant 0 : index
    %184 = memref.load %arg3[%183, %c0_118] : memref<2x8xf32, #tpu.memory_space<smem>>
    %c1_i32_119 = arith.constant 1 : i32
    %185 = arith.addi %0, %c1_i32_119 : i32
    %186 = arith.index_cast %185 : i32 to index
    %c4_120 = arith.constant 4 : index
    %187 = memref.load %arg3[%186, %c4_120] : memref<2x8xf32, #tpu.memory_space<smem>>
    %cst_121 = arith.constant 1.000000e+00 : f32
    %188 = arith.addf %cst_121, %184 : f32
    %189 = vector.broadcast %188 : f32 to vector<256xf32>
    %190 = arith.mulf %181, %189 : vector<256xf32>
    %191 = vector.broadcast %187 : f32 to vector<256xf32>
    %192 = arith.addf %190, %191 : vector<256xf32>
    %c1_122 = arith.constant 1 : index
    %c0_123 = arith.constant 0 : index
    %c0_124 = arith.constant 0 : index
    %193 = vector.load %arg5[%c1_122, %c0_123, %c0_124] : memref<2x4x256xf32, #tpu.memory_space<vmem>>, vector<1x1x256xf32>
    %194 = vector.shape_cast %193 : vector<1x1x256xf32> to vector<256xf32>
    %195 = vector.shape_cast %192 : vector<256xf32> to vector<1x1x256xf32>
    tpu.vector_store %arg5[%c1_122, %c0_123, %c0_124], %195 {strides = array<i32>} : memref<2x4x256xf32, #tpu.memory_space<vmem>>, vector<1x1x256xf32>,
    %c1_125 = arith.constant 1 : index
    %c0_126 = arith.constant 0 : index
    %c0_127 = arith.constant 0 : index
    %196 = vector.load %arg4[%c1_125, %c0_126, %c0_127] : memref<2x4x256xf32, #tpu.memory_space<vmem>>, vector<1x1x256xf32>
    %197 = vector.shape_cast %196 : vector<1x1x256xf32> to vector<256xf32>
    %198 = vector.broadcast %5 : f32 to vector<256xf32>
    %199 = arith.mulf %197, %198 : vector<256xf32>
    %c1_128 = arith.constant 1 : index
    %c1_129 = arith.constant 1 : index
    %c0_130 = arith.constant 0 : index
    %200 = vector.load %arg4[%c1_128, %c1_129, %c0_130] : memref<2x4x256xf32, #tpu.memory_space<vmem>>, vector<1x1x256xf32>
    %201 = vector.shape_cast %200 : vector<1x1x256xf32> to vector<256xf32>
    %202 = vector.broadcast %6 : f32 to vector<256xf32>
    %203 = arith.mulf %201, %202 : vector<256xf32>
    %204 = arith.addf %199, %203 : vector<256xf32>
    %c1_131 = arith.constant 1 : index
    %c2_132 = arith.constant 2 : index
    %c0_133 = arith.constant 0 : index
    %205 = vector.load %arg4[%c1_131, %c2_132, %c0_133] : memref<2x4x256xf32, #tpu.memory_space<vmem>>, vector<1x1x256xf32>
    %206 = vector.shape_cast %205 : vector<1x1x256xf32> to vector<256xf32>
    %207 = vector.broadcast %7 : f32 to vector<256xf32>
    %208 = arith.mulf %206, %207 : vector<256xf32>
    %209 = arith.addf %204, %208 : vector<256xf32>
    %c1_134 = arith.constant 1 : index
    %c3_135 = arith.constant 3 : index
    %c0_136 = arith.constant 0 : index
    %210 = vector.load %arg4[%c1_134, %c3_135, %c0_136] : memref<2x4x256xf32, #tpu.memory_space<vmem>>, vector<1x1x256xf32>
    %211 = vector.shape_cast %210 : vector<1x1x256xf32> to vector<256xf32>
    %212 = vector.broadcast %8 : f32 to vector<256xf32>
    %213 = arith.mulf %211, %212 : vector<256xf32>
    %214 = arith.addf %209, %213 : vector<256xf32>
    %215 = vector.broadcast %18 : f32 to vector<256xf32>
    %216 = arith.addf %214, %215 : vector<256xf32>
    %c1_i32_137 = arith.constant 1 : i32
    %217 = arith.addi %0, %c1_i32_137 : i32
    %218 = arith.index_cast %217 : i32 to index
    %c1_138 = arith.constant 1 : index
    %219 = memref.load %arg3[%218, %c1_138] : memref<2x8xf32, #tpu.memory_space<smem>>
    %c1_i32_139 = arith.constant 1 : i32
    %220 = arith.addi %0, %c1_i32_139 : i32
    %221 = arith.index_cast %220 : i32 to index
    %c5_140 = arith.constant 5 : index
    %222 = memref.load %arg3[%221, %c5_140] : memref<2x8xf32, #tpu.memory_space<smem>>
    %cst_141 = arith.constant 1.000000e+00 : f32
    %223 = arith.addf %cst_141, %219 : f32
    %224 = vector.broadcast %223 : f32 to vector<256xf32>
    %225 = arith.mulf %216, %224 : vector<256xf32>
    %226 = vector.broadcast %222 : f32 to vector<256xf32>
    %227 = arith.addf %225, %226 : vector<256xf32>
    %c1_142 = arith.constant 1 : index
    %c1_143 = arith.constant 1 : index
    %c0_144 = arith.constant 0 : index
    %228 = vector.load %arg5[%c1_142, %c1_143, %c0_144] : memref<2x4x256xf32, #tpu.memory_space<vmem>>, vector<1x1x256xf32>
    %229 = vector.shape_cast %228 : vector<1x1x256xf32> to vector<256xf32>
    %230 = vector.shape_cast %227 : vector<256xf32> to vector<1x1x256xf32>
    tpu.vector_store %arg5[%c1_142, %c1_143, %c0_144], %230 {strides = array<i32>} : memref<2x4x256xf32, #tpu.memory_space<vmem>>, vector<1x1x256xf32>,
    %c1_145 = arith.constant 1 : index
    %c0_146 = arith.constant 0 : index
    %c0_147 = arith.constant 0 : index
    %231 = vector.load %arg4[%c1_145, %c0_146, %c0_147] : memref<2x4x256xf32, #tpu.memory_space<vmem>>, vector<1x1x256xf32>
    %232 = vector.shape_cast %231 : vector<1x1x256xf32> to vector<256xf32>
    %233 = vector.broadcast %9 : f32 to vector<256xf32>
    %234 = arith.mulf %232, %233 : vector<256xf32>
    %c1_148 = arith.constant 1 : index
    %c1_149 = arith.constant 1 : index
    %c0_150 = arith.constant 0 : index
    %235 = vector.load %arg4[%c1_148, %c1_149, %c0_150] : memref<2x4x256xf32, #tpu.memory_space<vmem>>, vector<1x1x256xf32>
    %236 = vector.shape_cast %235 : vector<1x1x256xf32> to vector<256xf32>
    %237 = vector.broadcast %10 : f32 to vector<256xf32>
    %238 = arith.mulf %236, %237 : vector<256xf32>
    %239 = arith.addf %234, %238 : vector<256xf32>
    %c1_151 = arith.constant 1 : index
    %c2_152 = arith.constant 2 : index
    %c0_153 = arith.constant 0 : index
    %240 = vector.load %arg4[%c1_151, %c2_152, %c0_153] : memref<2x4x256xf32, #tpu.memory_space<vmem>>, vector<1x1x256xf32>
    %241 = vector.shape_cast %240 : vector<1x1x256xf32> to vector<256xf32>
    %242 = vector.broadcast %11 : f32 to vector<256xf32>
    %243 = arith.mulf %241, %242 : vector<256xf32>
    %244 = arith.addf %239, %243 : vector<256xf32>
    %c1_154 = arith.constant 1 : index
    %c3_155 = arith.constant 3 : index
    %c0_156 = arith.constant 0 : index
    %245 = vector.load %arg4[%c1_154, %c3_155, %c0_156] : memref<2x4x256xf32, #tpu.memory_space<vmem>>, vector<1x1x256xf32>
    %246 = vector.shape_cast %245 : vector<1x1x256xf32> to vector<256xf32>
    %247 = vector.broadcast %12 : f32 to vector<256xf32>
    %248 = arith.mulf %246, %247 : vector<256xf32>
    %249 = arith.addf %244, %248 : vector<256xf32>
    %250 = vector.broadcast %19 : f32 to vector<256xf32>
    %251 = arith.addf %249, %250 : vector<256xf32>
    %c1_i32_157 = arith.constant 1 : i32
    %252 = arith.addi %0, %c1_i32_157 : i32
    %253 = arith.index_cast %252 : i32 to index
    %c2_158 = arith.constant 2 : index
    %254 = memref.load %arg3[%253, %c2_158] : memref<2x8xf32, #tpu.memory_space<smem>>
    %c1_i32_159 = arith.constant 1 : i32
    %255 = arith.addi %0, %c1_i32_159 : i32
    %256 = arith.index_cast %255 : i32 to index
    %c6_160 = arith.constant 6 : index
    %257 = memref.load %arg3[%256, %c6_160] : memref<2x8xf32, #tpu.memory_space<smem>>
    %cst_161 = arith.constant 1.000000e+00 : f32
    %258 = arith.addf %cst_161, %254 : f32
    %259 = vector.broadcast %258 : f32 to vector<256xf32>
    %260 = arith.mulf %251, %259 : vector<256xf32>
    %261 = vector.broadcast %257 : f32 to vector<256xf32>
    %262 = arith.addf %260, %261 : vector<256xf32>
    %c1_162 = arith.constant 1 : index
    %c2_163 = arith.constant 2 : index
    %c0_164 = arith.constant 0 : index
    %263 = vector.load %arg5[%c1_162, %c2_163, %c0_164] : memref<2x4x256xf32, #tpu.memory_space<vmem>>, vector<1x1x256xf32>
    %264 = vector.shape_cast %263 : vector<1x1x256xf32> to vector<256xf32>
    %265 = vector.shape_cast %262 : vector<256xf32> to vector<1x1x256xf32>
    tpu.vector_store %arg5[%c1_162, %c2_163, %c0_164], %265 {strides = array<i32>} : memref<2x4x256xf32, #tpu.memory_space<vmem>>, vector<1x1x256xf32>,
    %c1_165 = arith.constant 1 : index
    %c0_166 = arith.constant 0 : index
    %c0_167 = arith.constant 0 : index
    %266 = vector.load %arg4[%c1_165, %c0_166, %c0_167] : memref<2x4x256xf32, #tpu.memory_space<vmem>>, vector<1x1x256xf32>
    %267 = vector.shape_cast %266 : vector<1x1x256xf32> to vector<256xf32>
    %268 = vector.broadcast %13 : f32 to vector<256xf32>
    %269 = arith.mulf %267, %268 : vector<256xf32>
    %c1_168 = arith.constant 1 : index
    %c1_169 = arith.constant 1 : index
    %c0_170 = arith.constant 0 : index
    %270 = vector.load %arg4[%c1_168, %c1_169, %c0_170] : memref<2x4x256xf32, #tpu.memory_space<vmem>>, vector<1x1x256xf32>
    %271 = vector.shape_cast %270 : vector<1x1x256xf32> to vector<256xf32>
    %272 = vector.broadcast %14 : f32 to vector<256xf32>
    %273 = arith.mulf %271, %272 : vector<256xf32>
    %274 = arith.addf %269, %273 : vector<256xf32>
    %c1_171 = arith.constant 1 : index
    %c2_172 = arith.constant 2 : index
    %c0_173 = arith.constant 0 : index
    %275 = vector.load %arg4[%c1_171, %c2_172, %c0_173] : memref<2x4x256xf32, #tpu.memory_space<vmem>>, vector<1x1x256xf32>
    %276 = vector.shape_cast %275 : vector<1x1x256xf32> to vector<256xf32>
    %277 = vector.broadcast %15 : f32 to vector<256xf32>
    %278 = arith.mulf %276, %277 : vector<256xf32>
    %279 = arith.addf %274, %278 : vector<256xf32>
    %c1_174 = arith.constant 1 : index
    %c3_175 = arith.constant 3 : index
    %c0_176 = arith.constant 0 : index
    %280 = vector.load %arg4[%c1_174, %c3_175, %c0_176] : memref<2x4x256xf32, #tpu.memory_space<vmem>>, vector<1x1x256xf32>
    %281 = vector.shape_cast %280 : vector<1x1x256xf32> to vector<256xf32>
    %282 = vector.broadcast %16 : f32 to vector<256xf32>
    %283 = arith.mulf %281, %282 : vector<256xf32>
    %284 = arith.addf %279, %283 : vector<256xf32>
    %285 = vector.broadcast %20 : f32 to vector<256xf32>
    %286 = arith.addf %284, %285 : vector<256xf32>
    %c1_i32_177 = arith.constant 1 : i32
    %287 = arith.addi %0, %c1_i32_177 : i32
    %288 = arith.index_cast %287 : i32 to index
    %c3_178 = arith.constant 3 : index
    %289 = memref.load %arg3[%288, %c3_178] : memref<2x8xf32, #tpu.memory_space<smem>>
    %c1_i32_179 = arith.constant 1 : i32
    %290 = arith.addi %0, %c1_i32_179 : i32
    %291 = arith.index_cast %290 : i32 to index
    %c7_180 = arith.constant 7 : index
    %292 = memref.load %arg3[%291, %c7_180] : memref<2x8xf32, #tpu.memory_space<smem>>
    %cst_181 = arith.constant 1.000000e+00 : f32
    %293 = arith.addf %cst_181, %289 : f32
    %294 = vector.broadcast %293 : f32 to vector<256xf32>
    %295 = arith.mulf %286, %294 : vector<256xf32>
    %296 = vector.broadcast %292 : f32 to vector<256xf32>
    %297 = arith.addf %295, %296 : vector<256xf32>
    %c1_182 = arith.constant 1 : index
    %c3_183 = arith.constant 3 : index
    %c0_184 = arith.constant 0 : index
    %298 = vector.load %arg5[%c1_182, %c3_183, %c0_184] : memref<2x4x256xf32, #tpu.memory_space<vmem>>, vector<1x1x256xf32>
    %299 = vector.shape_cast %298 : vector<1x1x256xf32> to vector<256xf32>
    %300 = vector.shape_cast %297 : vector<256xf32> to vector<1x1x256xf32>
    tpu.vector_store %arg5[%c1_182, %c3_183, %c0_184], %300 {strides = array<i32>} : memref<2x4x256xf32, #tpu.memory_space<vmem>>, vector<1x1x256xf32>,
    return
  }
  func.func @transform_0(%arg0: i32) -> (i32, i32) {
    %c0_i32 = arith.constant 0 : i32
    %c0_i32_0 = arith.constant 0 : i32
    %c0_i32_1 = arith.constant 0 : i32
    return %c0_i32, %c0_i32_0 : i32, i32
  }
  func.func @transform_1(%arg0: i32) -> i32 {
    %c0_i32 = arith.constant 0 : i32
    %c0_i32_0 = arith.constant 0 : i32
    return %c0_i32 : i32
  }
  func.func @transform_2(%arg0: i32) -> (i32, i32) {
    %c0_i32 = arith.constant 0 : i32
    %c0_i32_0 = arith.constant 0 : i32
    %c0_i32_1 = arith.constant 0 : i32
    return %c0_i32, %c0_i32_0 : i32, i32
  }
  func.func @transform_3(%arg0: i32) -> (i32, i32, i32) {
    %c0_i32 = arith.constant 0 : i32
    %c0_i32_0 = arith.constant 0 : i32
    %c0_i32_1 = arith.constant 0 : i32
    return %arg0, %c0_i32, %c0_i32_0 : i32, i32, i32
  }
  func.func @transform_4(%arg0: i32) -> (i32, i32, i32) {
    %c0_i32 = arith.constant 0 : i32
    %c0_i32_0 = arith.constant 0 : i32
    %c0_i32_1 = arith.constant 0 : i32
    return %arg0, %c0_i32, %c0_i32_0 : i32, i32, i32
  }
}

</mosaic_0001>

<bundles_post_ra>
// kernel: _apply_model_pallas.1
= control target key start
LH: loop header
LB: loop body
LE: loop exit
PB: predicated region body
PF: predicated region fallthrough
CT: control target
= control target key end

     0   :  { %9 = vsyncpa [#allocation3], 0  ;;  %s697_s0 = inlined_call_operand.vmem [shape: f32[4,4], index: 0, kind: input, shape index: {}]   ;;  %s698_s1 = inlined_call_operand.vmem [shape: f32[4], index: 1, kind: input, shape index: {}]   ;;  %s699_s2 = inlined_call_operand.vmem [shape: f32[2,8], index: 2, kind: input, shape index: {}]   ;;  %s700_s3 = inlined_call_operand.vmem [shape: f32[2,4,256], index: 3, kind: input, shape index: {}]   ;;  %s701_s4 = inlined_call_operand.vmem [shape: f32[2,4,256], index: 4, kind: output, shape index: {}]  }
   0x1   :  { %10 = vsyncpa [#allocation5], 0  ;;  %s27_s17 = sshll.u32 %s698_s1, 4  ;;  %s17_s20 = sshll.u32 %s697_s0, 4  ;;  %s28_s17 = int_to_ptr.vmem [resolvable:$true] %s27_s17  ;;  %s18_s20 = int_to_ptr.vmem [resolvable:$true] %s17_s20 }
   0x2   :  { %s372_s21 = scalar_lea.vmem %s28_s17, 16  ;;  %p377_p1 = scmp.lt.s32.totalorder %s28_s17, %s28_s17 }
   0x3   :  { %p373_p0 = scmp.ne.s32.totalorder %s28_s17, %s372_s21  ;;  %p378_p2 = scmp.lt.s32.totalorder %s372_s21, %s372_s21 }
   0x5   :  { %p379_p3 = por %p378_p2, %p377_p1 }
   0x7   :  { %p380_p4 = pnand %p379_p3, %p373_p0 }
   0x9   :  { %383 = shalt.err (!%p380_p4)
}
   0xa   :  { %s412_s22 = smov [#allocation4]   ;;  %s384_s23 = scalar_lea.vmem %s18_s20, 64 }
   0xb   :  { %30 = dma.vmem_to_smem %s28_s17, 16, %s412_s22, [#allocation5]  }
   0xc   :  { %p385_p5 = scmp.ne.s32.totalorder %s18_s20, %s384_s23  ;;  %p389_p6 = scmp.lt.s32.totalorder %s18_s20, %s18_s20 }
   0xd   :  { %p390_p7 = scmp.lt.s32.totalorder %s384_s23, %s384_s23 }
   0xf   :  { %p391_p8 = por %p390_p7, %p389_p6 }
  0x11   :  { %p392_p9 = pnand %p391_p8, %p385_p5 }
  0x13   :  { %395 = shalt.err (!%p392_p9)
}
  0x14   :  { %s413_s1 = smov [#allocation2]   ;;  %s37_s25 = sshll.u32 %s699_s2, 4  ;;  %s38_s25 = int_to_ptr.vmem [resolvable:$true] %s37_s25 }
  0x15   :  { %20 = dma.vmem_to_smem %s18_s20, 64, %s413_s1, [#allocation3]  }
  0x16   :  { %s396_s26 = scalar_lea.vmem %s38_s25, 32  ;;  %p401_p11 = scmp.lt.s32.totalorder %s38_s25, %s38_s25 }
  0x17   :  { %p397_p10 = scmp.ne.s32.totalorder %s38_s25, %s396_s26  ;;  %p402_p12 = scmp.lt.s32.totalorder %s396_s26, %s396_s26 }
  0x19   :  { %p403_p13 = por %p402_p12, %p401_p11 }
  0x1b   :  { %p404_p0 = pnand %p403_p13, %p397_p10 }
  0x1d   :  { %407 = shalt.err (!%p404_p0)
}
  0x1e   :  { %s414_s27 = smov [#allocation6]  }
  0x1f   :  { %40 = dma.vmem_to_smem %s38_s25, 32, %s414_s27, [#allocation5]  }
  0x20   :  { %408 = dma.done.wait [#allocation3], 64  }
  0x21   :  { %409 = vsyncadd [#allocation3], 4294967232 }
  0x22   :  { %410 = dma.done.wait [#allocation5], 48  }
  0x23   :  { %411 = vsyncadd [#allocation5], 4294967248 }
  0x24   :  { %52 = sfence }
  0x25   :  { %s449_s28 = sld [smem:[#allocation2]]  ;;  %v74_v0 = vld [vmem:[%s700_s3] ss:$4 sm:$0x3]  ;;  %v103_v24 = vlaneseq }
  0x26   :  { %s451_s29 = sld [smem:[#allocation2 + $0x1]]  ;;  %v319_v1 = vld [vmem:[%s700_s3 + $0x1] ss:$4 sm:$0x3] }
  0x27   :  { %s453_s2 = sld [smem:[#allocation2 + $0x2]]  ;;  %v320_v3 = vld [vmem:[%s700_s3 + $0x2] ss:$4 sm:$0x3]  ;;  %vm539_vm0 = vcmp.lt.s32.totalorder %v103_v24, 256 }
  0x28   :  { %s455_s30 = sld [smem:[#allocation2 + $0x3]]  ;;  %v321_v6 = vld [vmem:[%s700_s3 + $0x3] ss:$4 sm:$0x3] }
  0x29   :  { %s457_s5 = sld [smem:[#allocation4]]  ;;  %v108_v13 = vld [vmem:[%s700_s3] ss:$4 sm:$0x3] }
  0x2a   :  { %s465_s10 = sld [smem:[#allocation6]]  ;;  %v323_v15 = vld [vmem:[%s700_s3 + $0x1] ss:$4 sm:$0x3] }
  0x2b   :  { %v75_v2 = vstv %s449_s28  ;;  %s471_s13 = sld [smem:[#allocation6 + $0x4]]  ;;  %v324_v18 = vld [vmem:[%s700_s3 + $0x2] ss:$4 sm:$0x3] }
  0x2c   :  { %v76_v4 = vmul.f32 %v75_v2, %v74_v0  ;;  %v79_v5 = vstv %s451_s29  ;;  %s477_s16 = sld [smem:[#allocation2 + $0x80]]  ;;  %v325_v22 = vld [vmem:[%s700_s3 + $0x3] ss:$4 sm:$0x3] }
  0x2d   :  { %v80_v7 = vmul.f32 %v319_v1, %v79_v5  ;;  %v84_v8 = vstv %s453_s2  ;;  %s480_s17 = sld [smem:[#allocation2 + $0x81]]  ;;  %v341_v30 = vld [vmem:[%s700_s3 + $0x8] ss:$4 sm:$0x3] }
  0x2e   :  { %v85_v9 = vmul.f32 %v320_v3, %v84_v8  ;;  %v89_v10 = vstv %s455_s30  ;;  %s483_s18 = sld [smem:[#allocation2 + $0x82]]  ;;  %v136_v34 = vld [vmem:[%s700_s3] ss:$4 sm:$0x3]  ;;  %v194_v35 = vmul.f32 %v341_v30, %v75_v2 }
  0x2f   :  { %v81_v11 = vadd.f32 %v80_v7, %v76_v4  ;;  %v90_v12 = vmul.f32 %v321_v6, %v89_v10  ;;  %s485_s19 = sld [smem:[#allocation2 + $0x83]]  ;;  %v92_v16 = vstv %s457_s5  ;;  %v342_v36 = vld [vmem:[%s700_s3 + $0x9] ss:$4 sm:$0x3] }
  0x30   :  { %s98_s20 = sadd.f32 1.0, %s465_s10  ;;  %v329_v38 = vld [vmem:[%s700_s3 + $0x1] ss:$4 sm:$0x3]  ;;  %v197_v39 = vmul.f32 %v342_v36, %v79_v5 }
  0x31   :  { %v86_v14 = vadd.f32 %v85_v9, %v81_v11  ;;  %s491_s23 = sld [smem:[#allocation4 + $0x1]]  ;;  %v101_v31 = vstv %s471_s13  ;;  %v343_v40 = vld [vmem:[%s700_s3 + $0xa] ss:$4 sm:$0x3] }
  0x32   :  { %v109_v17 = vstv %s477_s16  ;;  %s501_s26 = sld [smem:[#allocation6 + $0x1]]  ;;  %v99_v23 = vstv %s98_s20  ;;  %v330_v43 = vld [vmem:[%s700_s3 + $0x2] ss:$4 sm:$0x3]  ;;  %v201_v44 = vmul.f32 %v343_v40, %v84_v8  ;;  %v198_v50 = vadd.f32 %v197_v39, %v194_v35 }
  0x33   :  { %v91_v19 = vadd.f32 %v90_v12, %v86_v14  ;;  %v110_v20 = vmul.f32 %v109_v17, %v108_v13  ;;  %v112_v21 = vstv %s480_s17  ;;  %s507_s29 = sld [smem:[#allocation6 + $0x5]]  ;;  %v344_v45 = vld [vmem:[%s700_s3 + $0xb] ss:$4 sm:$0x3] }
  0x34   :  { %v113_v25 = vmul.f32 %v323_v15, %v112_v21  ;;  %v116_v26 = vstv %s483_s18  ;;  %s510_s2 = sld [smem:[#allocation2 + $0x100]]  ;;  %v331_v49 = vld [vmem:[%s700_s3 + $0x3] ss:$4 sm:$0x3]  ;;  %v205_v54 = vmul.f32 %v344_v45, %v89_v10  ;;  %v202_v1 = vadd.f32 %v201_v44, %v198_v50 }
  0x35   :  { %v93_v27 = vadd.f32 %v92_v16, %v91_v19  ;;  %v117_v28 = vmul.f32 %v324_v18, %v116_v26  ;;  %v120_v29 = vstv %s485_s19  ;;  %s515_s30 = sld [smem:[#allocation2 + $0x101]]  ;;  %v348_v51 = vld [vmem:[%s700_s3 + $0x8] ss:$4 sm:$0x3] }
  0x36   :  { %v114_v32 = vadd.f32 %v113_v25, %v110_v20  ;;  %v121_v33 = vmul.f32 %v325_v22, %v120_v29  ;;  %s523_s8 = sld [smem:[#allocation2 + $0x102]]  ;;  %v221_v55 = vmul.f32 %v348_v51, %v109_v17  ;;  %v349_v56 = vld [vmem:[%s700_s3 + $0x9] ss:$4 sm:$0x3]  ;;  %v206_v20 = vadd.f32 %v205_v54, %v202_v1 }
  0x37   :  { %v100_v37 = vmul.f32 %v99_v23, %v93_v27  ;;  %s531_s14 = sld [smem:[#allocation2 + $0x103]]  ;;  %v123_v47 = vstv %s491_s23  ;;  %v223_v60 = vmul.f32 %v349_v56, %v112_v21  ;;  %v350_v61 = vld [vmem:[%s700_s3 + $0xa] ss:$4 sm:$0x3] }
  0x38   :  { %v118_v42 = vadd.f32 %v117_v28, %v114_v32  ;;  %s129_s18 = sadd.f32 1.0, %s501_s26  ;;  %v351_v2 = vld [vmem:[%s700_s3 + $0xb] ss:$4 sm:$0x3]  ;;  %v226_v6 = vmul.f32 %v350_v61, %v116_v26 }
  0x39   :  { %v102_v46 = vadd.f32 %v101_v31, %v100_v37  ;;  %v132_v48 = vstv %s507_s29  ;;  %s552_s0 = sld [smem:[#allocation4 + $0x2]]  ;;  %v224_v5 = vadd.f32 %v223_v60, %v221_v55  ;;  %v355_v7 = vld [vmem:[%s700_s3 + $0x8] ss:$4 sm:$0x3]  ;;  %v229_v26 = vmul.f32 %v351_v2, %v120_v29 }
  0x3a   :  { %v122_v52 = vadd.f32 %v121_v33, %v118_v42  ;;  %v137_v53 = vstv %s510_s2  ;;  %s561_s28 = sld [smem:[#allocation6 + $0x2]]  ;;  %v130_v57 = vstv %s129_s18  ;;  %v164_v11 = vld [vmem:[%s700_s3] ss:$4 sm:$0x3] }
  0x3b   :  { %107 = vst.msk [vmem:[%s701_s4] ss:$4 sm:$0x3] %vm539_vm0, %v102_v46  ;;  %v138_v58 = vmul.f32 %v137_v53, %v136_v34  ;;  %v140_v59 = vstv %s515_s30  ;;  %s572_s10 = sld [smem:[#allocation6 + $0x6]]  ;;  %v244_v14 = vmul.f32 %v355_v7, %v137_v53  ;;  %v227_v25 = vadd.f32 %v226_v6, %v224_v5 }
  0x3c   :  { %v124_v62 = vadd.f32 %v123_v47, %v122_v52  ;;  %v141_v63 = vmul.f32 %v329_v38, %v140_v59  ;;  %v144_v0 = vstv %s523_s8  ;;  %s580_s12 = sld [smem:[#allocation2 + $0x180]]  ;;  %v356_v12 = vld [vmem:[%s700_s3 + $0x9] ss:$4 sm:$0x3] }
  0x3d   :  { %v145_v3 = vmul.f32 %v330_v43, %v144_v0  ;;  %v148_v4 = vstv %s531_s14  ;;  %s586_s30 = sld [smem:[#allocation2 + $0x181]]  ;;  %v335_v13 = vld [vmem:[%s700_s3 + $0x1] ss:$4 sm:$0x3]  ;;  %v246_v21 = vmul.f32 %v356_v12, %v140_v59  ;;  %v230_v53 = vadd.f32 %v229_v26, %v227_v25 }
  0x3e   :  { %v131_v8 = vmul.f32 %v130_v57, %v124_v62  ;;  %v142_v9 = vadd.f32 %v141_v63, %v138_v58  ;;  %v149_v10 = vmul.f32 %v331_v49, %v148_v4  ;;  %s591_s8 = sld [smem:[#allocation2 + $0x182]]  ;;  %v357_v15 = vld [vmem:[%s700_s3 + $0xa] ss:$4 sm:$0x3]  ;;  %v207_v59 = vadd.f32 %v206_v20, %v92_v16 }
  0x3f   :  { %s599_s22 = sld [smem:[#allocation2 + $0x183]]  ;;  %v336_v19 = vld [vmem:[%s700_s3 + $0x2] ss:$4 sm:$0x3]  ;;  %v151_v23 = vstv %s552_s0  ;;  %v249_v27 = vmul.f32 %v357_v15, %v144_v0  ;;  %v247_v33 = vadd.f32 %v246_v21, %v244_v14  ;;  %v231_v1 = vadd.f32 %v230_v53, %v123_v47 }
  0x40   :  { %v133_v17 = vadd.f32 %v132_v48, %v131_v8  ;;  %v146_v18 = vadd.f32 %v145_v3, %v142_v9  ;;  %s157_s27 = sadd.f32 1.0, %s561_s28  ;;  %v358_v22 = vld [vmem:[%s700_s3 + $0xb] ss:$4 sm:$0x3] }
  0x41   :  { %s615_s2 = sld [smem:[#allocation4 + $0x3]]  ;;  %v337_v24 = vld [vmem:[%s700_s3 + $0x3] ss:$4 sm:$0x3]  ;;  %v160_v31 = vstv %s572_s10  ;;  %v252_v43 = vmul.f32 %v358_v22, %v148_v4  ;;  %v250_v46 = vadd.f32 %v249_v27, %v247_v33 }
  0x42   :  { %v362_v28 = vld [vmem:[%s700_s3 + $0x8] ss:$4 sm:$0x3]  ;;  %328 = vst.msk [vmem:[%s701_s4 + $0x1] ss:$4 sm:$0x3] %vm539_vm0, %v133_v17  ;;  %v150_v30 = vadd.f32 %v149_v10, %v146_v18  ;;  %v165_v32 = vstv %s580_s12  ;;  %v158_v34 = vstv %s157_s27 }
  0x43   :  { %s632_s0 = sld [smem:[#allocation6 + $0x3]]  ;;  %v363_v29 = vld [vmem:[%s700_s3 + $0x9] ss:$4 sm:$0x3]  ;;  %v166_v35 = vmul.f32 %v165_v32, %v164_v11  ;;  %v168_v36 = vstv %s586_s30  ;;  %v267_v37 = vmul.f32 %v362_v28, %v165_v32  ;;  %v253_v60 = vadd.f32 %v252_v43, %v250_v46 }
  0x44   :  { %s638_s20 = sld [smem:[#allocation6 + $0x7]]  ;;  %v364_v38 = vld [vmem:[%s700_s3 + $0xa] ss:$4 sm:$0x3]  ;;  %v152_v39 = vadd.f32 %v151_v23, %v150_v30  ;;  %v169_v40 = vmul.f32 %v335_v13, %v168_v36  ;;  %v172_v42 = vstv %s591_s8  ;;  %v269_v48 = vmul.f32 %v363_v29, %v168_v36 }
  0x45   :  { %s644_s10 = sld [smem:[#allocation6 + $0x80]]  ;;  %v173_v44 = vmul.f32 %v336_v19, %v172_v42  ;;  %v176_v45 = vstv %s599_s22  ;;  %v272_v52 = vmul.f32 %v364_v38, %v172_v42  ;;  %v365_v55 = vld [vmem:[%s700_s3 + $0xb] ss:$4 sm:$0x3]  ;;  %v254_v6 = vadd.f32 %v253_v60, %v151_v23 }
  0x46   :  { %s647_s12 = sld [smem:[#allocation6 + $0x84]]  ;;  %v159_v49 = vmul.f32 %v158_v34, %v152_v39  ;;  %v170_v50 = vadd.f32 %v169_v40, %v166_v35  ;;  %v177_v51 = vmul.f32 %v337_v24, %v176_v45  ;;  %v270_v54 = vadd.f32 %v269_v48, %v267_v37 }
  0x47   :  { %s649_s30 = sld [smem:[#allocation6 + $0x81]]  ;;  %v179_v58 = vstv %s615_s2  ;;  %v275_v63 = vmul.f32 %v365_v55, %v176_v45 }
  0x48   :  { %s651_s8 = sld [smem:[#allocation6 + $0x85]]  ;;  %v161_v56 = vadd.f32 %v160_v31, %v159_v49  ;;  %v174_v57 = vadd.f32 %v173_v44, %v170_v50  ;;  %v273_v62 = vadd.f32 %v272_v52, %v270_v54 }
  0x49   :  { %s185_s24 = sadd.f32 1.0, %s632_s0 }
  0x4a   :  { %s359_s25 = sld [smem:[#allocation6 + $0x82]]  ;;  %334 = vst.msk [vmem:[%s701_s4 + $0x2] ss:$4 sm:$0x3] %vm539_vm0, %v161_v56  ;;  %v178_v61 = vadd.f32 %v177_v51, %v174_v57  ;;  %v188_v4 = vstv %s638_s20  ;;  %v276_v10 = vadd.f32 %v275_v63, %v273_v62 }
  0x4b   :  { %s213_s29 = sadd.f32 1.0, %s644_s10  ;;  %v186_v0 = vstv %s185_s24 }
  0x4c   :  { %s360_s3 = sld [smem:[#allocation6 + $0x86]]  ;;  %v180_v2 = vadd.f32 %v179_v58, %v178_v61  ;;  %v216_v16 = vstv %s647_s12  ;;  %v277_v18 = vadd.f32 %v276_v10, %v179_v58 }
  0x4d   :  { %v214_v3 = vstv %s213_s29  ;;  %s236_s5 = sadd.f32 1.0, %s649_s30 }
  0x4e   :  { %v215_v5 = vmul.f32 %v214_v3, %v207_v59  ;;  %s366_s6 = sld [smem:[#allocation6 + $0x83]]  ;;  %v187_v7 = vmul.f32 %v186_v0, %v180_v2  ;;  %v239_v9 = vstv %s651_s8 }
  0x4f   :  { %v237_v8 = vstv %s236_s5  ;;  %s367_s7 = sld [smem:[#allocation6 + $0x87]] }
  0x50   :  { %v217_v11 = vadd.f32 %v216_v16, %v215_v5  ;;  %v238_v12 = vmul.f32 %v237_v8, %v231_v1  ;;  %s259_s9 = sadd.f32 1.0, %s359_s25  ;;  %v189_v13 = vadd.f32 %v188_v4, %v187_v7 }
  0x52   :  { %347 = vst.msk [vmem:[%s701_s4 + $0x8] ss:$4 sm:$0x3] %vm539_vm0, %v217_v11  ;;  %v240_v47 = vadd.f32 %v239_v9, %v238_v12  ;;  %v260_v14 = vstv %s259_s9  ;;  %v262_v15 = vstv %s360_s3  ;;  %340 = vst.msk [vmem:[%s701_s4 + $0x3] ss:$4 sm:$0x3] %vm539_vm0, %v189_v13 }
  0x53   :  { %v261_v17 = vmul.f32 %v260_v14, %v254_v6 }
  0x54   :  { %354 = vst.msk [vmem:[%s701_s4 + $0x9] ss:$4 sm:$0x3] %vm539_vm0, %v240_v47  ;;  %s282_s16 = sadd.f32 1.0, %s366_s6 }
  0x55   :  { %v263_v19 = vadd.f32 %v262_v15, %v261_v17  ;;  %v285_v21 = vstv %s367_s7 }
  0x56   :  { %v283_v20 = vstv %s282_s16 }
  0x57   :  { %361 = vst.msk [vmem:[%s701_s4 + $0xa] ss:$4 sm:$0x3] %vm539_vm0, %v263_v19  ;;  %v284_v22 = vmul.f32 %v283_v20, %v277_v18 }
  0x59   :  { %v286_v23 = vadd.f32 %v285_v21, %v284_v22 }
  0x5b   :  { %368 = vst.msk [vmem:[%s701_s4 + $0xb] ss:$4 sm:$0x3] %vm539_vm0, %v286_v23 }
  0x5c   :  { %293 = vsyncpa [#allocation3], 1 }
  0x5d   :  { %294 = vsyncpa [#allocation5], 1 }

</bundles_post_ra>
